<compile_context>
chip_gen: v6e
topology: v6e:2x2x1
jax: 0.10.0
libtpu: 0.0.40
codegen_flags: <defaults>
</compile_context>

<pallas_src>
import math

import jax
import jax.numpy as jnp
from jax.experimental import pallas as pl
from jax.experimental.pallas import tpu as pltpu


# ----------------------------------------------------------------------------
# Fused C2f_DSConv kernel: whole forward for one image per grid step.
# All activations are (C, H*W): channels in sublanes, pixels in lanes.
# ----------------------------------------------------------------------------
def _make_c2f_kernel(n, add_flags, c, H, W, pad):
    HW = H * W
    PAD = pad  # lane-aligned halo offset inside the zero-padded line buffer

    def kernel(x_ref, w1_ref, b1_ref, *rest):
        m_refs = rest[:4 * n]
        w2_ref = rest[4 * n]
        b2_ref = rest[4 * n + 1]
        o_ref = rest[4 * n + 2]
        buf_ref = rest[4 * n + 3]            # VMEM scratch (c, HW + 2*PAD)

        def silu(v):
            return v * jax.nn.sigmoid(v)

        # cv1: 1x1 conv + folded BN + SiLU  ->  (2c, HW)
        x = x_ref[0]
        y = silu(jnp.dot(w1_ref[...], x, preferred_element_type=jnp.float32)
                 + b1_ref[...])
        ys = [y[0:c, :], y[c:2 * c, :]]       # chunk(2, channel dim)

        # Width-boundary masks for the 3x3 conv (hoisted out of the tap loop).
        ww = jax.lax.broadcasted_iota(jnp.int32, (c, HW), 1) % W
        mask_l = ww >= 1                      # source pixel valid when dw == -1
        mask_r = ww <= W - 2                  # source pixel valid when dw == +1

        buf_ref[...] = jnp.zeros_like(buf_ref)   # zero halos once per grid step

        for i in range(n):                    # Bottleneck_DSConv blocks
            wm1_ref, bm1_ref, wm2_ref, bm2_ref = m_refs[4 * i:4 * i + 4]
            h_in = ys[-1]
            # bottleneck cv1: 1x1 conv + BN + SiLU
            z1 = silu(jnp.dot(wm1_ref[...], h_in,
                              preferred_element_type=jnp.float32) + bm1_ref[...])
            # bottleneck cv2: 3x3 conv (stride 1, zero-pad 1) as 9 shifted
            # matmuls from the zero-padded VMEM line buffer (no im2col in HBM).
            # Lane-aligned store (PAD and HW are multiples of 128).
            buf_ref[:, PAD:PAD + HW] = z1
            acc = jnp.zeros((c, HW), jnp.float32)
            t = 0
            for dh in (-1, 0, 1):
                for dw in (-1, 0, 1):
                    s = PAD + dh * W + dw     # static lane offset
                    tap = buf_ref[:, s:s + HW]
                    if dw == -1:
                        tap = jnp.where(mask_l, tap, 0.0)
                    elif dw == 1:
                        tap = jnp.where(mask_r, tap, 0.0)
                    acc = acc + jnp.dot(wm2_ref[t], tap,
                                        preferred_element_type=jnp.float32)
                    t += 1
            z2 = silu(acc + bm2_ref[...])
            if add_flags[i]:
                z2 = h_in + z2
            ys.append(z2)

        # cv2 on the virtual concat: cat @ W == sum_i chunk_i @ W_chunk_i, so
        # the (2+n)*c-channel concat tensor is never materialized.
        w2 = w2_ref[...]
        pre = jnp.dot(w2[:, 0:2 * c], y, preferred_element_type=jnp.float32)
        for i in range(n):
            pre = pre + jnp.dot(w2[:, (2 + i) * c:(3 + i) * c], ys[2 + i],
                                preferred_element_type=jnp.float32)
        o_ref[0] = silu(pre + b2_ref[...]).astype(o_ref.dtype)

    return kernel


# ----------------------------------------------------------------------------
# Host-side weight folding (BN scale folded into the weights; bias kept).
# ----------------------------------------------------------------------------
def _fold_1x1(p):
    w = p["w"][:, :, 0, 0] * p["bn_scale"][:, None]           # (Cout, Cin)
    return w.astype(jnp.float32), p["bn_bias"].astype(jnp.float32)[:, None]


def _fold_3x3(p):
    cout, cin = p["w"].shape[0], p["w"].shape[1]
    w = jnp.transpose(p["w"], (2, 3, 0, 1)).reshape(9, cout, cin)  # tap-major
    w = w * p["bn_scale"][None, :, None]
    return w.astype(jnp.float32), p["bn_bias"].astype(jnp.float32)[:, None]


def _const_spec(arr):
    zeros = (0,) * arr.ndim
    return pl.BlockSpec(arr.shape, lambda b: zeros)


def c2f_dsconv_forward(x_nchw, params):
    """C2f_DSConv forward.  x_nchw: (N, C1, H, W) f32 -> (N, C2, H, W) f32."""
    N, c1, H, W = x_nchw.shape
    HW = H * W
    c = params["c"]
    c2 = params["cv2"]["w"].shape[0]
    n = len(params["m"])

    w1, b1 = _fold_1x1(params["cv1"])
    w2, b2 = _fold_1x1(params["cv2"])
    m_args, add_flags = [], []
    for bp in params["m"]:
        wm1, bm1 = _fold_1x1(bp["cv1"])
        wm2, bm2 = _fold_3x3(bp["cv2"])
        m_args += [wm1, bm1, wm2, bm2]
        add_flags.append(bool(bp["add"]))

    # NCHW -> (N, C, H*W) is a free reshape (no transpose); pixels become the
    # lane dimension so every matmul output and the final store is lane-dense.
    x_flat = x_nchw.reshape(N, c1, HW).astype(jnp.float32)
    weight_args = [w1, b1] + m_args + [w2, b2]

    # Lane-aligned halo for the 3x3 line buffer: must be >= W + 1 and a
    # multiple of 128 so the per-bottleneck store is an unmasked full vst.
    pad = max(128, 128 * pl.cdiv(W + 1, 128))

    kernel = _make_c2f_kernel(n=n, add_flags=tuple(add_flags), c=c, H=H, W=W,
                              pad=pad)

    out_flat = pl.pallas_call(
        kernel,
        out_shape=jax.ShapeDtypeStruct((N, c2, HW), jnp.float32),
        grid=(N,),
        in_specs=[pl.BlockSpec((1, c1, HW), lambda b: (b, 0, 0))]
                 + [_const_spec(a) for a in weight_args],
        out_specs=pl.BlockSpec((1, c2, HW), lambda b: (b, 0, 0)),
        scratch_shapes=[pltpu.VMEM((c, HW + 2 * pad), jnp.float32)],
        compiler_params=pltpu.CompilerParams(dimension_semantics=("parallel",)),
    )(x_flat, *weight_args)

    return out_flat.reshape(N, c2, H, W)


# ----------------------------------------------------------------------------
# Deterministic parameter construction (synthetic, no checkpoint)
# ----------------------------------------------------------------------------
def init_conv_bn(key, cin, cout, k):
    kw, kg, kb, km, kv = jax.random.split(key, 5)
    fan_in = cin * k * k
    bound = 1.0 / math.sqrt(fan_in)
    w = jax.random.uniform(kw, (cout, cin, k, k), jnp.float32, -bound, bound)
    gamma = jax.random.uniform(kg, (cout,), jnp.float32, 0.5, 1.5)
    beta = 0.1 * jax.random.normal(kb, (cout,), jnp.float32)
    mean = 0.1 * jax.random.normal(km, (cout,), jnp.float32)
    var = jax.random.uniform(kv, (cout,), jnp.float32, 0.5, 1.5)
    eps = 1e-3                                 # ultralytics BatchNorm2d eps
    scale = gamma / jnp.sqrt(var + eps)
    bias = beta - mean * scale
    return {"w": w, "bn_scale": scale, "bn_bias": bias}


def init_c2f_params(key, c1, c2, n=1, shortcut=False, e=0.5):
    c = int(c2 * e)
    keys = jax.random.split(key, 2 + 2 * n)
    params = {
        "c": c,
        "cv1": init_conv_bn(keys[0], c1, 2 * c, 1),
        "cv2": init_conv_bn(keys[1], (2 + n) * c, c2, 1),
        "m": [],
    }
    for i in range(n):
        # Bottleneck_DSConv(c, c, shortcut, g=1, e=1.0): cv1 1x1 c->c, cv2 3x3 c->c
        params["m"].append({
            "cv1": init_conv_bn(keys[2 + 2 * i], c, c, 1),
            "cv2": init_conv_bn(keys[3 + 2 * i], c, c, 3),
            "add": bool(shortcut),             # and c1 == c2 (true here)
        })
    return params


# ----------------------------------------------------------------------------
# Pure-JAX (XLA conv) reference — used only for an in-script sanity check.
# ----------------------------------------------------------------------------
def _ref_conv_bn_silu(x, p, k):
    pad = k // 2
    y = jax.lax.conv_general_dilated(
        x, p["w"], window_strides=(1, 1), padding=((pad, pad), (pad, pad)),
        dimension_numbers=("NCHW", "OIHW", "NCHW"))
    y = y * p["bn_scale"][None, :, None, None] + p["bn_bias"][None, :, None, None]
    return y * jax.nn.sigmoid(y)


def _ref_c2f_forward(x, params):
    y = _ref_conv_bn_silu(x, params["cv1"], 1)
    c = params["c"]
    ys = [y[:, :c], y[:, c:]]
    for bp in params["m"]:
        z = _ref_conv_bn_silu(ys[-1], bp["cv1"], 1)
        z = _ref_conv_bn_silu(z, bp["cv2"], 3)
        if bp["add"]:
            z = ys[-1] + z
        ys.append(z)
    cat = jnp.concatenate(ys, axis=1)
    return _ref_conv_bn_silu(cat, params["cv2"], 1)


if __name__ == "__main__":
    key = jax.random.PRNGKey(0)
    k_x, k_p = jax.random.split(key)

    c1, c2, n = 4, 8, 1                        # C2f_DSConv(c1=4, c2=8, n=1)
    x = jax.random.normal(k_x, (2, c1, 16, 16), jnp.float32)   # NCHW
    params = init_c2f_params(k_p, c1, c2, n=n, shortcut=False, e=0.5)

    out = c2f_dsconv_forward(x, params)
    jax.block_until_ready(out)
    assert out.shape == (2, c2, 16, 16), out.shape
    assert out.dtype == jnp.float32

    # Loose tolerance accounts for MXU bf16-pass rounding differences between
    # the Pallas matmuls and the XLA convolution reference.
    ref = _ref_c2f_forward(x, params)
    max_err = float(jnp.max(jnp.abs(out - ref)))
    assert max_err < 5e-2, f"max abs error vs XLA reference: {max_err}"
    print("KERNEL_OK")
</pallas_src>

<mosaic_0001>
module attributes {stable_mosaic.version = 11 : i64} {
  func.func @kernel(%arg0: i32, %arg1: memref<1x4x256xf32, #tpu.memory_space<vmem>>, %arg2: memref<8x4xf32, #tpu.memory_space<vmem>>, %arg3: memref<8x1xf32, #tpu.memory_space<vmem>>, %arg4: memref<4x4xf32, #tpu.memory_space<vmem>>, %arg5: memref<4x1xf32, #tpu.memory_space<vmem>>, %arg6: memref<9x4x4xf32, #tpu.memory_space<vmem>>, %arg7: memref<4x1xf32, #tpu.memory_space<vmem>>, %arg8: memref<8x12xf32, #tpu.memory_space<vmem>>, %arg9: memref<8x1xf32, #tpu.memory_space<vmem>>, %arg10: memref<1x8x256xf32, #tpu.memory_space<vmem>>, %arg11: memref<4x512xf32, #tpu.memory_space<vmem>>) attributes {dimension_semantics = [#tpu.dimension_semantics<parallel>], iteration_bounds = array<i64: 2>, scalar_prefetch = 0 : i64, scratch_operands = 1 : i64, tpu.core_type = #tpu.core_type<tc>, window_params = [{transform_indices = @transform_0, window_bounds = array<i64: 1, 4, 256>}, {pipeline_mode = #tpu.pipeline_mode<synchronous>, transform_indices = @transform_1, window_bounds = array<i64: 8, 4>}, {pipeline_mode = #tpu.pipeline_mode<synchronous>, transform_indices = @transform_2, window_bounds = array<i64: 8, 1>}, {pipeline_mode = #tpu.pipeline_mode<synchronous>, transform_indices = @transform_3, window_bounds = array<i64: 4, 4>}, {pipeline_mode = #tpu.pipeline_mode<synchronous>, transform_indices = @transform_4, window_bounds = array<i64: 4, 1>}, {pipeline_mode = #tpu.pipeline_mode<synchronous>, transform_indices = @transform_5, window_bounds = array<i64: 9, 4, 4>}, {pipeline_mode = #tpu.pipeline_mode<synchronous>, transform_indices = @transform_6, window_bounds = array<i64: 4, 1>}, {pipeline_mode = #tpu.pipeline_mode<synchronous>, transform_indices = @transform_7, window_bounds = array<i64: 8, 12>}, {pipeline_mode = #tpu.pipeline_mode<synchronous>, transform_indices = @transform_8, window_bounds = array<i64: 8, 1>}, {transform_indices = @transform_9, window_bounds = array<i64: 1, 8, 256>}]} {
    %c0 = arith.constant 0 : index
    %c0_0 = arith.constant 0 : index
    %c0_1 = arith.constant 0 : index
    %0 = vector.load %arg1[%c0, %c0_0, %c0_1] : memref<1x4x256xf32, #tpu.memory_space<vmem>>, vector<1x4x256xf32>
    %1 = vector.shape_cast %0 : vector<1x4x256xf32> to vector<4x256xf32>
    %c0_2 = arith.constant 0 : index
    %c0_3 = arith.constant 0 : index
    %2 = vector.load %arg2[%c0_2, %c0_3] : memref<8x4xf32, #tpu.memory_space<vmem>>, vector<8x4xf32>
    %cst = arith.constant dense<0.000000e+00> : vector<8x256xf32>
    %3 = tpu.matmul %2, %1, %cst {dimension_numbers = #tpu.dot_dimension_numbers<[1], [0], [0], [1], [0, 0, 1, 1], [], []>} : vector<8x4xf32>, vector<4x256xf32>, vector<8x256xf32> -> vector<8x256xf32>
    %c0_4 = arith.constant 0 : index
    %c0_5 = arith.constant 0 : index
    %4 = vector.load %arg3[%c0_4, %c0_5] : memref<8x1xf32, #tpu.memory_space<vmem>>, vector<8x1xf32>
    %5 = vector.broadcast %4 : vector<8x1xf32> to vector<8x256xf32>
    %6 = arith.addf %3, %5 : vector<8x256xf32>
    %7 = arith.negf %6 : vector<8x256xf32>
    %8 = math.exp %7 : vector<8x256xf32>
    %cst_6 = arith.constant 1.000000e+00 : f32
    %9 = vector.broadcast %cst_6 : f32 to vector<8x256xf32>
    %10 = arith.addf %9, %8 : vector<8x256xf32>
    %11 = arith.divf %9, %10 : vector<8x256xf32>
    %12 = arith.mulf %6, %11 : vector<8x256xf32>
    %13 = vector.extract_strided_slice %12 {offsets = [4, 0], sizes = [4, 256], strides = [1, 1]} : vector<8x256xf32> to vector<4x256xf32>
    %14 = tpu.iota {dimensions = array<i32: 1>} : vector<4x256xi32>
    %c16_i32 = arith.constant 16 : i32
    %c0_i32 = arith.constant 0 : i32
    %15 = arith.cmpi eq, %c16_i32, %c0_i32 : i32
    %c1_i32 = arith.constant 1 : i32
    %16 = arith.select %15, %c1_i32, %c16_i32 : i32
    %17 = vector.broadcast %16 : i32 to vector<4x256xi32>
    %18 = arith.remsi %14, %17 : vector<4x256xi32>
    %c0_i32_7 = arith.constant 0 : i32
    %19 = vector.broadcast %c0_i32_7 : i32 to vector<4x256xi32>
    %20 = arith.cmpi ne, %18, %19 : vector<4x256xi32>
    %c0_i32_8 = arith.constant 0 : i32
    %21 = vector.broadcast %c0_i32_8 : i32 to vector<4x256xi32>
    %22 = arith.cmpi slt, %18, %21 : vector<4x256xi32>
    %c0_i32_9 = arith.constant 0 : i32
    %23 = arith.cmpi slt, %16, %c0_i32_9 : i32
    %24 = vector.broadcast %23 : i1 to vector<4x256xi1>
    %25 = vector.broadcast %24 : vector<4x256xi1> to vector<4x256xi1>
    %26 = arith.xori %22, %25 : vector<4x256xi1>
    %27 = arith.andi %26, %20 : vector<4x256xi1>
    %28 = vector.broadcast %16 : i32 to vector<4x256xi32>
    %29 = arith.addi %18, %28 : vector<4x256xi32>
    %30 = arith.select %27, %29, %18 : vector<4x256xi1>, vector<4x256xi32>
    %c1_i32_10 = arith.constant 1 : i32
    %31 = vector.broadcast %c1_i32_10 : i32 to vector<4x256xi32>
    %32 = arith.cmpi sge, %30, %31 : vector<4x256xi32>
    %c14_i32 = arith.constant 14 : i32
    %33 = vector.broadcast %c14_i32 : i32 to vector<4x256xi32>
    %34 = arith.cmpi sle, %30, %33 : vector<4x256xi32>
    %cst_11 = arith.constant 0.000000e+00 : f32
    %35 = vector.broadcast %cst_11 : f32 to vector<4x512xf32>
    %c0_12 = arith.constant 0 : index
    %c0_13 = arith.constant 0 : index
    %36 = vector.load %arg11[%c0_12, %c0_13] : memref<4x512xf32, #tpu.memory_space<vmem>>, vector<4x512xf32>
    tpu.vector_store %arg11[%c0_12, %c0_13], %35 {strides = array<i32>} : memref<4x512xf32, #tpu.memory_space<vmem>>, vector<4x512xf32>,
    %c0_14 = arith.constant 0 : index
    %c0_15 = arith.constant 0 : index
    %37 = vector.load %arg4[%c0_14, %c0_15] : memref<4x4xf32, #tpu.memory_space<vmem>>, vector<4x4xf32>
    %cst_16 = arith.constant dense<0.000000e+00> : vector<4x256xf32>
    %38 = tpu.matmul %37, %13, %cst_16 {dimension_numbers = #tpu.dot_dimension_numbers<[1], [0], [0], [1], [0, 0, 1, 1], [], []>} : vector<4x4xf32>, vector<4x256xf32>, vector<4x256xf32> -> vector<4x256xf32>
    %c0_17 = arith.constant 0 : index
    %c0_18 = arith.constant 0 : index
    %39 = vector.load %arg5[%c0_17, %c0_18] : memref<4x1xf32, #tpu.memory_space<vmem>>, vector<4x1xf32>
    %40 = vector.broadcast %39 : vector<4x1xf32> to vector<4x256xf32>
    %41 = arith.addf %38, %40 : vector<4x256xf32>
    %42 = arith.negf %41 : vector<4x256xf32>
    %43 = math.exp %42 : vector<4x256xf32>
    %cst_19 = arith.constant 1.000000e+00 : f32
    %44 = vector.broadcast %cst_19 : f32 to vector<4x256xf32>
    %45 = arith.addf %44, %43 : vector<4x256xf32>
    %46 = arith.divf %44, %45 : vector<4x256xf32>
    %47 = arith.mulf %41, %46 : vector<4x256xf32>
    %c0_20 = arith.constant 0 : index
    %c128 = arith.constant 128 : index
    %48 = vector.load %arg11[%c0_20, %c128] : memref<4x512xf32, #tpu.memory_space<vmem>>, vector<4x256xf32>
    tpu.vector_store %arg11[%c0_20, %c128], %47 {strides = array<i32>} : memref<4x512xf32, #tpu.memory_space<vmem>>, vector<4x256xf32>,
    %cst_21 = arith.constant 0.000000e+00 : f32
    %49 = vector.broadcast %cst_21 : f32 to vector<4x256xf32>
    %c0_22 = arith.constant 0 : index
    %c111 = arith.constant 111 : index
    %50 = vector.load %arg11[%c0_22, %c111] : memref<4x512xf32, #tpu.memory_space<vmem>>, vector<4x256xf32>
    %cst_23 = arith.constant 0.000000e+00 : f32
    %51 = vector.broadcast %cst_23 : f32 to vector<4x256xf32>
    %52 = arith.select %32, %50, %51 : vector<4x256xi1>, vector<4x256xf32>
    %c0_24 = arith.constant 0 : index
    %c0_25 = arith.constant 0 : index
    %c0_26 = arith.constant 0 : index
    %53 = vector.load %arg6[%c0_24, %c0_25, %c0_26] : memref<9x4x4xf32, #tpu.memory_space<vmem>>, vector<1x4x4xf32>
    %54 = vector.shape_cast %53 : vector<1x4x4xf32> to vector<4x4xf32>
    %cst_27 = arith.constant dense<0.000000e+00> : vector<4x256xf32>
    %55 = tpu.matmul %54, %52, %cst_27 {dimension_numbers = #tpu.dot_dimension_numbers<[1], [0], [0], [1], [0, 0, 1, 1], [], []>} : vector<4x4xf32>, vector<4x256xf32>, vector<4x256xf32> -> vector<4x256xf32>
    %56 = arith.addf %49, %55 : vector<4x256xf32>
    %c0_28 = arith.constant 0 : index
    %c112 = arith.constant 112 : index
    %57 = vector.load %arg11[%c0_28, %c112] : memref<4x512xf32, #tpu.memory_space<vmem>>, vector<4x256xf32>
    %c1 = arith.constant 1 : index
    %c0_29 = arith.constant 0 : index
    %c0_30 = arith.constant 0 : index
    %58 = vector.load %arg6[%c1, %c0_29, %c0_30] : memref<9x4x4xf32, #tpu.memory_space<vmem>>, vector<1x4x4xf32>
    %59 = vector.shape_cast %58 : vector<1x4x4xf32> to vector<4x4xf32>
    %cst_31 = arith.constant dense<0.000000e+00> : vector<4x256xf32>
    %60 = tpu.matmul %59, %57, %cst_31 {dimension_numbers = #tpu.dot_dimension_numbers<[1], [0], [0], [1], [0, 0, 1, 1], [], []>} : vector<4x4xf32>, vector<4x256xf32>, vector<4x256xf32> -> vector<4x256xf32>
    %61 = arith.addf %56, %60 : vector<4x256xf32>
    %c0_32 = arith.constant 0 : index
    %c113 = arith.constant 113 : index
    %62 = vector.load %arg11[%c0_32, %c113] : memref<4x512xf32, #tpu.memory_space<vmem>>, vector<4x256xf32>
    %cst_33 = arith.constant 0.000000e+00 : f32
    %63 = vector.broadcast %cst_33 : f32 to vector<4x256xf32>
    %64 = arith.select %34, %62, %63 : vector<4x256xi1>, vector<4x256xf32>
    %c2 = arith.constant 2 : index
    %c0_34 = arith.constant 0 : index
    %c0_35 = arith.constant 0 : index
    %65 = vector.load %arg6[%c2, %c0_34, %c0_35] : memref<9x4x4xf32, #tpu.memory_space<vmem>>, vector<1x4x4xf32>
    %66 = vector.shape_cast %65 : vector<1x4x4xf32> to vector<4x4xf32>
    %cst_36 = arith.constant dense<0.000000e+00> : vector<4x256xf32>
    %67 = tpu.matmul %66, %64, %cst_36 {dimension_numbers = #tpu.dot_dimension_numbers<[1], [0], [0], [1], [0, 0, 1, 1], [], []>} : vector<4x4xf32>, vector<4x256xf32>, vector<4x256xf32> -> vector<4x256xf32>
    %68 = arith.addf %61, %67 : vector<4x256xf32>
    %c0_37 = arith.constant 0 : index
    %c127 = arith.constant 127 : index
    %69 = vector.load %arg11[%c0_37, %c127] : memref<4x512xf32, #tpu.memory_space<vmem>>, vector<4x256xf32>
    %cst_38 = arith.constant 0.000000e+00 : f32
    %70 = vector.broadcast %cst_38 : f32 to vector<4x256xf32>
    %71 = arith.select %32, %69, %70 : vector<4x256xi1>, vector<4x256xf32>
    %c3 = arith.constant 3 : index
    %c0_39 = arith.constant 0 : index
    %c0_40 = arith.constant 0 : index
    %72 = vector.load %arg6[%c3, %c0_39, %c0_40] : memref<9x4x4xf32, #tpu.memory_space<vmem>>, vector<1x4x4xf32>
    %73 = vector.shape_cast %72 : vector<1x4x4xf32> to vector<4x4xf32>
    %cst_41 = arith.constant dense<0.000000e+00> : vector<4x256xf32>
    %74 = tpu.matmul %73, %71, %cst_41 {dimension_numbers = #tpu.dot_dimension_numbers<[1], [0], [0], [1], [0, 0, 1, 1], [], []>} : vector<4x4xf32>, vector<4x256xf32>, vector<4x256xf32> -> vector<4x256xf32>
    %75 = arith.addf %68, %74 : vector<4x256xf32>
    %c0_42 = arith.constant 0 : index
    %c128_43 = arith.constant 128 : index
    %76 = vector.load %arg11[%c0_42, %c128_43] : memref<4x512xf32, #tpu.memory_space<vmem>>, vector<4x256xf32>
    %c4 = arith.constant 4 : index
    %c0_44 = arith.constant 0 : index
    %c0_45 = arith.constant 0 : index
    %77 = vector.load %arg6[%c4, %c0_44, %c0_45] : memref<9x4x4xf32, #tpu.memory_space<vmem>>, vector<1x4x4xf32>
    %78 = vector.shape_cast %77 : vector<1x4x4xf32> to vector<4x4xf32>
    %cst_46 = arith.constant dense<0.000000e+00> : vector<4x256xf32>
    %79 = tpu.matmul %78, %76, %cst_46 {dimension_numbers = #tpu.dot_dimension_numbers<[1], [0], [0], [1], [0, 0, 1, 1], [], []>} : vector<4x4xf32>, vector<4x256xf32>, vector<4x256xf32> -> vector<4x256xf32>
    %80 = arith.addf %75, %79 : vector<4x256xf32>
    %c0_47 = arith.constant 0 : index
    %c129 = arith.constant 129 : index
    %81 = vector.load %arg11[%c0_47, %c129] : memref<4x512xf32, #tpu.memory_space<vmem>>, vector<4x256xf32>
    %cst_48 = arith.constant 0.000000e+00 : f32
    %82 = vector.broadcast %cst_48 : f32 to vector<4x256xf32>
    %83 = arith.select %34, %81, %82 : vector<4x256xi1>, vector<4x256xf32>
    %c5 = arith.constant 5 : index
    %c0_49 = arith.constant 0 : index
    %c0_50 = arith.constant 0 : index
    %84 = vector.load %arg6[%c5, %c0_49, %c0_50] : memref<9x4x4xf32, #tpu.memory_space<vmem>>, vector<1x4x4xf32>
    %85 = vector.shape_cast %84 : vector<1x4x4xf32> to vector<4x4xf32>
    %cst_51 = arith.constant dense<0.000000e+00> : vector<4x256xf32>
    %86 = tpu.matmul %85, %83, %cst_51 {dimension_numbers = #tpu.dot_dimension_numbers<[1], [0], [0], [1], [0, 0, 1, 1], [], []>} : vector<4x4xf32>, vector<4x256xf32>, vector<4x256xf32> -> vector<4x256xf32>
    %87 = arith.addf %80, %86 : vector<4x256xf32>
    %c0_52 = arith.constant 0 : index
    %c143 = arith.constant 143 : index
    %88 = vector.load %arg11[%c0_52, %c143] : memref<4x512xf32, #tpu.memory_space<vmem>>, vector<4x256xf32>
    %cst_53 = arith.constant 0.000000e+00 : f32
    %89 = vector.broadcast %cst_53 : f32 to vector<4x256xf32>
    %90 = arith.select %32, %88, %89 : vector<4x256xi1>, vector<4x256xf32>
    %c6 = arith.constant 6 : index
    %c0_54 = arith.constant 0 : index
    %c0_55 = arith.constant 0 : index
    %91 = vector.load %arg6[%c6, %c0_54, %c0_55] : memref<9x4x4xf32, #tpu.memory_space<vmem>>, vector<1x4x4xf32>
    %92 = vector.shape_cast %91 : vector<1x4x4xf32> to vector<4x4xf32>
    %cst_56 = arith.constant dense<0.000000e+00> : vector<4x256xf32>
    %93 = tpu.matmul %92, %90, %cst_56 {dimension_numbers = #tpu.dot_dimension_numbers<[1], [0], [0], [1], [0, 0, 1, 1], [], []>} : vector<4x4xf32>, vector<4x256xf32>, vector<4x256xf32> -> vector<4x256xf32>
    %94 = arith.addf %87, %93 : vector<4x256xf32>
    %c0_57 = arith.constant 0 : index
    %c144 = arith.constant 144 : index
    %95 = vector.load %arg11[%c0_57, %c144] : memref<4x512xf32, #tpu.memory_space<vmem>>, vector<4x256xf32>
    %c7 = arith.constant 7 : index
    %c0_58 = arith.constant 0 : index
    %c0_59 = arith.constant 0 : index
    %96 = vector.load %arg6[%c7, %c0_58, %c0_59] : memref<9x4x4xf32, #tpu.memory_space<vmem>>, vector<1x4x4xf32>
    %97 = vector.shape_cast %96 : vector<1x4x4xf32> to vector<4x4xf32>
    %cst_60 = arith.constant dense<0.000000e+00> : vector<4x256xf32>
    %98 = tpu.matmul %97, %95, %cst_60 {dimension_numbers = #tpu.dot_dimension_numbers<[1], [0], [0], [1], [0, 0, 1, 1], [], []>} : vector<4x4xf32>, vector<4x256xf32>, vector<4x256xf32> -> vector<4x256xf32>
    %99 = arith.addf %94, %98 : vector<4x256xf32>
    %c0_61 = arith.constant 0 : index
    %c145 = arith.constant 145 : index
    %100 = vector.load %arg11[%c0_61, %c145] : memref<4x512xf32, #tpu.memory_space<vmem>>, vector<4x256xf32>
    %cst_62 = arith.constant 0.000000e+00 : f32
    %101 = vector.broadcast %cst_62 : f32 to vector<4x256xf32>
    %102 = arith.select %34, %100, %101 : vector<4x256xi1>, vector<4x256xf32>
    %c8 = arith.constant 8 : index
    %c0_63 = arith.constant 0 : index
    %c0_64 = arith.constant 0 : index
    %103 = vector.load %arg6[%c8, %c0_63, %c0_64] : memref<9x4x4xf32, #tpu.memory_space<vmem>>, vector<1x4x4xf32>
    %104 = vector.shape_cast %103 : vector<1x4x4xf32> to vector<4x4xf32>
    %cst_65 = arith.constant dense<0.000000e+00> : vector<4x256xf32>
    %105 = tpu.matmul %104, %102, %cst_65 {dimension_numbers = #tpu.dot_dimension_numbers<[1], [0], [0], [1], [0, 0, 1, 1], [], []>} : vector<4x4xf32>, vector<4x256xf32>, vector<4x256xf32> -> vector<4x256xf32>
    %106 = arith.addf %99, %105 : vector<4x256xf32>
    %c0_66 = arith.constant 0 : index
    %c0_67 = arith.constant 0 : index
    %107 = vector.load %arg7[%c0_66, %c0_67] : memref<4x1xf32, #tpu.memory_space<vmem>>, vector<4x1xf32>
    %108 = vector.broadcast %107 : vector<4x1xf32> to vector<4x256xf32>
    %109 = arith.addf %106, %108 : vector<4x256xf32>
    %110 = arith.negf %109 : vector<4x256xf32>
    %111 = math.exp %110 : vector<4x256xf32>
    %cst_68 = arith.constant 1.000000e+00 : f32
    %112 = vector.broadcast %cst_68 : f32 to vector<4x256xf32>
    %113 = arith.addf %112, %111 : vector<4x256xf32>
    %114 = arith.divf %112, %113 : vector<4x256xf32>
    %115 = arith.mulf %109, %114 : vector<4x256xf32>
    %c0_69 = arith.constant 0 : index
    %c0_70 = arith.constant 0 : index
    %116 = vector.load %arg8[%c0_69, %c0_70] : memref<8x12xf32, #tpu.memory_space<vmem>>, vector<8x12xf32>
    %117 = vector.extract_strided_slice %116 {offsets = [0, 0], sizes = [8, 8], strides = [1, 1]} : vector<8x12xf32> to vector<8x8xf32>
    %cst_71 = arith.constant dense<0.000000e+00> : vector<8x256xf32>
    %118 = tpu.matmul %117, %12, %cst_71 {dimension_numbers = #tpu.dot_dimension_numbers<[1], [0], [0], [1], [0, 0, 1, 1], [], []>} : vector<8x8xf32>, vector<8x256xf32>, vector<8x256xf32> -> vector<8x256xf32>
    %119 = vector.extract_strided_slice %116 {offsets = [0, 8], sizes = [8, 4], strides = [1, 1]} : vector<8x12xf32> to vector<8x4xf32>
    %cst_72 = arith.constant dense<0.000000e+00> : vector<8x256xf32>
    %120 = tpu.matmul %119, %115, %cst_72 {dimension_numbers = #tpu.dot_dimension_numbers<[1], [0], [0], [1], [0, 0, 1, 1], [], []>} : vector<8x4xf32>, vector<4x256xf32>, vector<8x256xf32> -> vector<8x256xf32>
    %121 = arith.addf %118, %120 : vector<8x256xf32>
    %c0_73 = arith.constant 0 : index
    %c0_74 = arith.constant 0 : index
    %122 = vector.load %arg9[%c0_73, %c0_74] : memref<8x1xf32, #tpu.memory_space<vmem>>, vector<8x1xf32>
    %123 = vector.broadcast %122 : vector<8x1xf32> to vector<8x256xf32>
    %124 = arith.addf %121, %123 : vector<8x256xf32>
    %125 = arith.negf %124 : vector<8x256xf32>
    %126 = math.exp %125 : vector<8x256xf32>
    %cst_75 = arith.constant 1.000000e+00 : f32
    %127 = vector.broadcast %cst_75 : f32 to vector<8x256xf32>
    %128 = arith.addf %127, %126 : vector<8x256xf32>
    %129 = arith.divf %127, %128 : vector<8x256xf32>
    %130 = arith.mulf %124, %129 : vector<8x256xf32>
    %c0_76 = arith.constant 0 : index
    %c0_77 = arith.constant 0 : index
    %c0_78 = arith.constant 0 : index
    %131 = vector.load %arg10[%c0_76, %c0_77, %c0_78] : memref<1x8x256xf32, #tpu.memory_space<vmem>>, vector<1x8x256xf32>
    %132 = vector.shape_cast %131 : vector<1x8x256xf32> to vector<8x256xf32>
    %133 = vector.shape_cast %130 : vector<8x256xf32> to vector<1x8x256xf32>
    tpu.vector_store %arg10[%c0_76, %c0_77, %c0_78], %133 {strides = array<i32>} : memref<1x8x256xf32, #tpu.memory_space<vmem>>, vector<1x8x256xf32>,
    return
  }
  func.func @transform_0(%arg0: i32) -> (i32, i32, i32) {
    %c0_i32 = arith.constant 0 : i32
    %c0_i32_0 = arith.constant 0 : i32
    %c0_i32_1 = arith.constant 0 : i32
    return %arg0, %c0_i32, %c0_i32_0 : i32, i32, i32
  }
  func.func @transform_1(%arg0: i32) -> (i32, i32) {
    %c0_i32 = arith.constant 0 : i32
    %c0_i32_0 = arith.constant 0 : i32
    %c0_i32_1 = arith.constant 0 : i32
    return %c0_i32, %c0_i32_0 : i32, i32
  }
  func.func @transform_2(%arg0: i32) -> (i32, i32) {
    %c0_i32 = arith.constant 0 : i32
    %c0_i32_0 = arith.constant 0 : i32
    %c0_i32_1 = arith.constant 0 : i32
    return %c0_i32, %c0_i32_0 : i32, i32
  }
  func.func @transform_3(%arg0: i32) -> (i32, i32) {
    %c0_i32 = arith.constant 0 : i32
    %c0_i32_0 = arith.constant 0 : i32
    %c0_i32_1 = arith.constant 0 : i32
    return %c0_i32, %c0_i32_0 : i32, i32
  }
  func.func @transform_4(%arg0: i32) -> (i32, i32) {
    %c0_i32 = arith.constant 0 : i32
    %c0_i32_0 = arith.constant 0 : i32
    %c0_i32_1 = arith.constant 0 : i32
    return %c0_i32, %c0_i32_0 : i32, i32
  }
  func.func @transform_5(%arg0: i32) -> (i32, i32, i32) {
    %c0_i32 = arith.constant 0 : i32
    %c0_i32_0 = arith.constant 0 : i32
    %c0_i32_1 = arith.constant 0 : i32
    %c0_i32_2 = arith.constant 0 : i32
    return %c0_i32, %c0_i32_0, %c0_i32_1 : i32, i32, i32
  }
  func.func @transform_6(%arg0: i32) -> (i32, i32) {
    %c0_i32 = arith.constant 0 : i32
    %c0_i32_0 = arith.constant 0 : i32
    %c0_i32_1 = arith.constant 0 : i32
    return %c0_i32, %c0_i32_0 : i32, i32
  }
  func.func @transform_7(%arg0: i32) -> (i32, i32) {
    %c0_i32 = arith.constant 0 : i32
    %c0_i32_0 = arith.constant 0 : i32
    %c0_i32_1 = arith.constant 0 : i32
    return %c0_i32, %c0_i32_0 : i32, i32
  }
  func.func @transform_8(%arg0: i32) -> (i32, i32) {
    %c0_i32 = arith.constant 0 : i32
    %c0_i32_0 = arith.constant 0 : i32
    %c0_i32_1 = arith.constant 0 : i32
    return %c0_i32, %c0_i32_0 : i32, i32
  }
  func.func @transform_9(%arg0: i32) -> (i32, i32, i32) {
    %c0_i32 = arith.constant 0 : i32
    %c0_i32_0 = arith.constant 0 : i32
    %c0_i32_1 = arith.constant 0 : i32
    return %arg0, %c0_i32, %c0_i32_0 : i32, i32, i32
  }
}

</mosaic_0001>

<bundles_post_ra>
// kernel: tpu_custom_call.1
= control target key start
LH: loop header
LB: loop body
LE: loop exit
PB: predicated region body
PF: predicated region fallthrough
CT: control target
= control target key end

     0   :  { %14 = vsyncpa [#allocation4], 0  ;;  %s2286_s0 = inlined_call_operand.vmem [shape: f32[2,4,256], index: 0, kind: input, shape index: {}]   ;;  %s2287_s1 = inlined_call_operand.vmem [shape: f32[8,4], index: 1, kind: input, shape index: {}]   ;;  %s2288_s2 = inlined_call_operand.vmem [shape: f32[8,1], index: 2, kind: input, shape index: {}]   ;;  %s2289_s3 = inlined_call_operand.vmem [shape: f32[4,4], index: 3, kind: input, shape index: {}]   ;;  %s2290_s4 = inlined_call_operand.vmem [shape: f32[4,1], index: 4, kind: input, shape index: {}]   ;;  %s2291_s5 = inlined_call_operand.vmem [shape: f32[9,4,4], index: 5, kind: input, shape index: {}]   ;;  %s2292_s6 = inlined_call_operand.vmem [shape: f32[4,1], index: 6, kind: input, shape index: {}]   ;;  %s2293_s7 = inlined_call_operand.vmem [shape: f32[8,12], index: 7, kind: input, shape index: {}]   ;;  %s2294_s8 = inlined_call_operand.vmem [shape: f32[8,1], index: 8, kind: input, shape index: {}]   ;;  %s2295_s9 = inlined_call_operand.hbm [shape: f32[2,8,256], index: 9, kind: output, shape index: {}]  }
   0x1   :  { %16 = vsyncpa [#allocation4 + $0x1], 0  ;;  %s2009_s30 = smov 0   ;;  %s2011_s10 = smov 0  }
   0x2   :  { %s2013_s11 = smov 0   ;;  %s2015_s12 = smov 0  }
   0x3 LB: > { %s2030_s13 = sadd.s32 4294967295, %s1945_s12   ;;  %s1732_s14 = sadd.s32 4294967294, %s1945_s12   ;;  %s1945_s12 = sphi %s2015_s12, %s2309_s12   ;;  %s1941_s11 = sphi %s2013_s11, %s2308_s11   ;;  %s1937_s10 = sphi %s2011_s10, %s2307_s10   ;;  %s1933_s30 = sphi %s2009_s30, %s2306_s30  }
   0x4   : > { %s2034_s15 = sadd.s32 1, %s1945_s12   ;;  %s223_s16 = sadd.s32 1, %s1941_s11 }
   0x5   : > { %s220_s17 = ssub.s32 %s1945_s12, %s2034_s15  ;;  %p233_p0 = scmp.ne.s32.totalorder %s1941_s11, %s1937_s10 }
   0x6   : > { %p221_p1 = scmp.eq.s32.totalorder %s220_s17, 0  ;;  %p234_p2 = scmp.eq.s32.totalorder %s2030_s13, 1 }
   0x7   : > { %p239_p3 = scmp.ne.s32.totalorder %s1937_s10, %s1933_s30  ;;  %p240_p4 = scmp.eq.s32.totalorder %s1732_s14, 1 }
   0x8   : > { %s2045_s18 = scalar_select %p221_p1, %s1941_s11, %s223_s16  }
   0x9   : > { %p2047_p5 = por %p234_p2, %p233_p0  ;;  %p2051_p6 = por %p240_p4, %p239_p3 }
   0xa   : > { %p1735_p7 = scmp.ge.s32.totalorder %s1945_s12, 1  ;;  %p290_p8 = scmp.lt.s32.totalorder %s1945_s12, 3 }
   0xc   : > { %p291_p9 = pnand %p1735_p7, %p290_p8 }
   0xd   : > { %p326_p10 = scmp.lt.s32.totalorder (!%p291_p9), %s2030_s13, 1  ;;  %s1949_s22 = smov (!%p291_p9), 127  }
   0xe   : > { %294 = sbr.rel (%p291_p9) target bundleno = 1143 (0x477), region = 56  ;;  %s1951_s24 = smov (!%p291_p9), 112  }
   0xf   : > { %s1952_s25 = smov (!%p291_p9), 16   ;;  %s1954_s27 = smov (!%p291_p9), 15  }
  0x10   : > { %s1955_s28 = smov (!%p291_p9), 1   ;;  %s323_s16 = sand.u32 (!%p291_p9), 1, %s1937_s10  }
  0x11   : > { %s1736_s17 = sshll.u32 (!%p291_p9), %s323_s16, 4  ;;  %s1798_s21 = sshll.u32 (!%p291_p9), %s2030_s13, 8 }
  0x13   : > { %v1947_v0 = vmov 0.0   ;;  %v1948_v1 = vmov 0   ;;  %v333_v2 = vld [vmem:[%s2288_s2] sm:$0xff]  ;;  %s327_s23 = scalar_select %p326_p10, %s2030_s13, 1  ;;  %vm345_vm0 = vcmask 1043456   ;;  %vm341_vm1 = vcmask 31744  }
  0x14   : > { %414 = vmatprep.mubr.f32.mxu0 %v1947_v0  ;;  %466 = vst [vmem:[#allocation2] sm:$0xff] %v1947_v0  ;;  %467 = vst [vmem:[#allocation2 + $0x8] sm:$0xff] %v1947_v0  ;;  %1849 = vset.pattern.permute.xlu0 %v1948_v1  ;;  %v469_v3 = vld [vmem:[%s2290_s4] sm:$0xf]  ;;  %v435_v59 = vlaneseq  ;;  %vm587_vm2 = vcmask 138240   ;;  %vm775_vm5 = vcmask 121856  }
  0x15   : > { %336 = vperm.xlu0 %1849, %v333_v2   ;;  %550 = vmatprep.mubr.f32.mxu1 %v1947_v0  ;;  %s1797_s26 = sshll.u32 %s327_s23, 3  ;;  %v332_v6 = vld [vmem:[%s2287_s1] sm:$0xff]  ;;  %s1950_s23 = smov 113   ;;  %vm603_vm6 = vcmask 130048   ;;  %vm877_vm9 = vcmask 7168   ;;  %vm1064_vm10 = vcmask 1039360  }
  0x16   : > { %s330_s29 = scalar_lea.vmem %s2286_s0, %s1797_s26  ;;  %v468_v24 = vld [vmem:[%s2289_s3] sm:$0xf]  ;;  %s1953_s26 = smov 17   ;;  %v436_v62 = vand.u32 127, %v435_v59  ;;  %vm1270_vm11 = vcmask 916480   ;;  %vm1166_vm12 = vcmask 924672  }
  0x17   : > { %v331_v4 = vld [vmem:[%s330_s29] sm:$0xff]  ;;  %s1956_s29 = smov 111   ;;  %vm1364_vm13 = vcmask 908288   ;;  %v1776_v59 = vld [vmem:[%s2291_s5 + $0x1c] sm:$0xf]  ;;  %vm1560_vm14 = vcmask 64512  }
  0x18   : > { %v340_v5 = vcombine.high %v331_v4, %v331_v4  ;;  %v1455_v51 = vld [vmem:[%s2292_s6] sm:$0xf]  ;;  %v437_v2 = vadd.s32 128, %v436_v62 }
  0x19   : > { %472 = vperm.xlu0 %1849, %v469_v3   ;;  %v1634_v52 = vld [vmem:[%s2294_s8] sm:$0xff] }
  0x1a   : > { %1739 = vmatprep.subr.msk.mxu0 %vm345_vm0, %v340_v5  ;;  %v2123_v53 = vld [vmem:[%s2293_s7] sm:$0xff]  ;;  %v442_v5 = vand.u32 15, %v436_v62 }
  0x1b   : > { %1740 = vmatpush1.msk.msra.mxu0 %vm345_vm0, %v331_v4  ;;  %v1054_v25 = vld [vmem:[#allocation2 + $0xc] sm:$0xf] }
  0x1c   : > { %1741 = vmatmul.mubr.msk.f32.vlgmr.msra.gmra.mxu0 %vm341_vm1, %v332_v6  ;;  %1062 = vrot.lane.b32.xlu1 %v1054_v25, %s1949_s22  ;;  %v1156_v26 = vld [vmem:[#allocation2 + $0xc] sm:$0xf]  ;;  %v449_v6 = vand.u32 15, %v437_v2  ;;  %vm2132_vm3 = vcmp.ge.s32.totalorder %v442_v5, 1  ;;  %vm2153_vm8 = vcmp.le.s32.totalorder %v442_v5, 14 }
  0x1d   : > { %677 = vmatprep.mubr.f32.mxu0 %v1947_v0  ;;  %v1258_v27 = vld [vmem:[#allocation2 + $0xc] sm:$0xf]  ;;  %1164 = vrot.lane.b32.xlu0 %v1156_v26, %s1950_s23 }
  0x1e   : > { %v1354_v50 = vld [vmem:[#allocation2 + $0xc] sm:$0xf]  ;;  %vm2136_vm4 = vcmp.ge.s32.totalorder %v449_v6, 1  ;;  %vm2148_vm7 = vcmp.le.s32.totalorder %v449_v6, 14 }
  0x20   : > { %1268 = vrot.lane.b32.xlu1 %v1258_v27, %s1951_s24 }
  0x8e   : > { %v1063_v54 = vpop.permute.xlu1 %1062 }
  0x90   : > { %v337_v7 = vpop.permute.xlu0 %336 }
  0x92   : > { %v2126_v55 = vpop.permute.xlu1 %1268 }
  0x94   : > { %v473_v28 = vpop.permute.xlu0 %472 }
  0x98   : > { %v2128_v56 = vpop.permute.xlu0 %1164 }
  0xdc   : > { %v416_v8 = vpop.f32.mrf.mxu0 }
  0xdd   : > { %v417_v9 = vadd.f32 %v416_v8, %v337_v7 }
  0xde   : > { %v418_v10 = vpop.f32.mrf.mxu0 }
  0xdf   : > { %v1742_v11 = vmul.f32 -1.442695, %v417_v9  ;;  %v419_v12 = vadd.f32 %v418_v10, %v337_v7 }
  0xe1   : > { %1852 = vpow2.f32 %v1742_v11  ;;  %v1743_v13 = vmul.f32 -1.442695, %v419_v12 }
  0xe3   : > { %1854 = vpow2.f32 %v1743_v13 }
  0xee   : > { %v1853_v14 = vpop.eup %1852 }
  0xef   : > { %v427_v15 = vadd.f32 1.0, %v1853_v14 }
  0xf0   : > { %v1855_v16 = vpop.eup %1854 }
  0xf1   : > { %1856 = vrcp.f32 %v427_v15  ;;  %v428_v17 = vadd.f32 1.0, %v1855_v16 }
  0xf3   : > { %1858 = vrcp.f32 %v428_v17  ;;  %v594_v17 = vld [vmem:[%s2291_s5] sm:$0xf] }
  0xfe   : > { %v1857_v18 = vpop.eup %1856 }
  0xff   : > { %v2079_v20 = vmul.f32 %v1857_v18, %v417_v9 }
 0x100   : > { %v1859_v19 = vpop.eup %1858 }
 0x101   : > { %v2081_v21 = vmul.f32 %v1859_v19, %v419_v12  ;;  %v477_v23 = vrot.slane %v2079_v20, 4 }
 0x103   : > { %v478_v22 = vrot.slane %v2081_v21, 4 }
 0x105   : > { %1744 = vmatprep.subr.msk.mxu1 %vm345_vm0, %v478_v22 }
 0x106   : > { %1745 = vmatpush1.msk.msra.mxu1 %vm345_vm0, %v477_v23 }
 0x107   : > { %1746 = vmatmul.mubr.msk.f32.vlgmr.msra.gmra.mxu1 %vm341_vm1, %v468_v24 }
 0x108   : > { %757 = vmatprep.mubr.f32.mxu1 %v1947_v0 }
 0x1c7   : > { %v552_v29 = vpop.f32.mrf.mxu1 }
 0x1c8   : > { %v553_v30 = vadd.f32 %v552_v29, %v473_v28 }
 0x1c9   : > { %v554_v31 = vpop.f32.mrf.mxu1 }
 0x1ca   : > { %v1747_v32 = vmul.f32 -1.442695, %v553_v30  ;;  %v555_v33 = vadd.f32 %v554_v31, %v473_v28  ;;  %v1749_v28 = vld [vmem:[%s2291_s5 + $0x4] sm:$0xf] }
 0x1cc   : > { %1860 = vpow2.f32 %v1747_v32  ;;  %v1748_v34 = vmul.f32 -1.442695, %v555_v33 }
 0x1ce   : > { %1862 = vpow2.f32 %v1748_v34 }
 0x1d9   : > { %v1861_v35 = vpop.eup %1860 }
 0x1da   : > { %v563_v36 = vadd.f32 1.0, %v1861_v35  ;;  %v1756_v35 = vld [vmem:[%s2291_s5 + $0x8] sm:$0xf] }
 0x1db   : > { %v1863_v37 = vpop.eup %1862 }
 0x1dc   : > { %1864 = vrcp.f32 %v563_v36  ;;  %v564_v38 = vadd.f32 1.0, %v1863_v37 }
 0x1de   : > { %1866 = vrcp.f32 %v564_v38 }
 0x1e9   : > { %v1865_v39 = vpop.eup %1864 }
 0x1ea   : > { %v569_v41 = vmul.f32 %v1865_v39, %v553_v30 }
 0x1eb   : > { %v1867_v40 = vpop.eup %1866 }
 0x1ec   : > { %v570_v42 = vmul.f32 %v1867_v40, %v555_v33  ;;  %v1760_v40 = vld [vmem:[%s2291_s5 + $0xc] sm:$0xf] }
 0x1ee   : > { %v2095_v43 = vcombine.low %v569_v41, %v570_v42  ;;  %v2104_v49 = vcombine.low %v570_v42, %v570_v42 }
 0x1f0   : > { %575 = vst [vmem:[#allocation2 + $0x4] sm:$0xff] %v2095_v43 }
 0x1f7   : > { %v577_v44 = vld [vmem:[#allocation2 + $0x8] sm:$0xf]  ;;  %v576_v45 = vld [vmem:[#allocation2] sm:$0xff] }
 0x1f8   : > { %601 = vrot.lane.b32.xlu1 %v577_v44, %s1952_s25  ;;  %597 = vrot.lane.b32.xlu0 %v576_v45, %s1952_s25  ;;  %v867_v46 = vld [vmem:[#allocation2 + $0x8] sm:$0xf]  ;;  %v768_v48 = vcombine.high %v576_v45, %v576_v45 }
 0x1f9   : > { %v765_v47 = vld [vmem:[#allocation2 + $0x8] sm:$0xf] }
 0x1fc   : > { %585 = vrot.lane.b32.xlu1 %v577_v44, %s1953_s26  ;;  %769 = vrot.lane.b32.xlu0 %v576_v45, %s1954_s27 }
 0x200   : > { %581 = vrot.lane.b32.xlu1 %v576_v45, %s1953_s26  ;;  %875 = vrot.lane.b32.xlu0 %v867_v46, %s1955_s28 }
 0x204   : > { %773 = vrot.lane.b32.xlu1 %v765_v47, %s1954_s27  ;;  %1058 = vrot.lane.b32.xlu0 %v2095_v43, %s1949_s22 }
 0x208   : > { %871 = vrot.lane.b32.xlu1 %v576_v45, %s1955_s28  ;;  %1264 = vrot.lane.b32.xlu0 %v2095_v43, %s1951_s24 }
 0x20c   : > { %1160 = vrot.lane.b32.xlu1 %v2095_v43, %s1950_s23  ;;  %583 = vrot.lane.b32.xlu0 %v768_v48, %s1953_s26  ;;  %s1671_s26 = scalar_lea.hbm %s2295_s9, %s1798_s21 }
 0x210   : > { %771 = vrot.lane.b32.xlu0 %v768_v48, %s1954_s27  ;;  %599 = vrot.lane.b32.xlu1 %v768_v48, %s1952_s25  ;;  %s1659_s27 = scalar_lea.sflag [#allocation4], %s323_s16 }
 0x214   : > { %1060 = vrot.lane.b32.xlu0 %v2104_v49, %s1949_s22  ;;  %873 = vrot.lane.b32.xlu1 %v768_v48, %s1955_s28  ;;  %s325_s22 = scalar_lea.vmem [#allocation3], %s1736_s17 }
 0x218   : > { %1266 = vrot.lane.b32.xlu0 %v2104_v49, %s1951_s24  ;;  %1162 = vrot.lane.b32.xlu1 %v2104_v49, %s1950_s23  ;;  %s1957_s23 = smov 120   ;;  %s1673_s24 = sshll.u32 %s325_s22, 4  ;;  %s1674_s24 = int_to_ptr.vmem [resolvable:$true] %s1673_s24 }
 0x219   : > { %s1885_s28 = scalar_lea.vmem %s1674_s24, 256 }
 0x21a   : > { %p1886_p11 = scmp.ne.s32.totalorder %s1674_s24, %s1885_s28 }
 0x21c   : > { %1362 = vrot.lane.b32.xlu0 %v1354_v50, %s1956_s29  ;;  %1360 = vrot.lane.b32.xlu1 %v2104_v49, %s1956_s29  ;;  %v1764_v50 = vld [vmem:[%s2291_s5 + $0x10] sm:$0xf]  ;;  %p1887_p12 = pnand %p1886_p11, %p2047_p5 }
 0x21e   : > { %p1888_p13 = pneg %p1887_p12 }
 0x220   : > { %1458 = vperm.xlu0 %1849, %v1455_v51   ;;  %1358 = vrot.lane.b32.xlu1 %v2095_v43, %s1956_s29  ;;  %v1768_v51 = vld [vmem:[%s2291_s5 + $0x14] sm:$0xf]  ;;  %s1958_s29 = smov [#allocation3]  }
 0x221   : > { %s1889_s13 = sshll.u32 %s1958_s29, 4  ;;  %s1890_s13 = int_to_ptr.vmem [resolvable:$false] %s1889_s13 }
 0x222   : > { %s1891_s14 = scalar_lea.vmem %s1890_s13, 512  ;;  %p1892_p0 = scmp.lt.s32.totalorder %s1674_s24, %s1890_s13 }
 0x223   : > { %p1893_p1 = scmp.lt.s32.totalorder %s1891_s14, %s1885_s28 }
 0x224   : > { %1637 = vperm.xlu0 %1849, %v1634_v52   ;;  %1479 = vrot.lane.b32.xlu1 %v2123_v53, %s1957_s23 }
 0x225   : > { %p1894_p2 = por %p1893_p1, %p1892_p0 }
 0x227   : > { %p1895_p3 = pnand %p1894_p2, %p1888_p13 }
 0x26a   : > { %v602_v57 = vpop.permute.xlu1 %601  ;;  %v598_v58 = vpop.permute.xlu0 %597 }
 0x26e   : > { %v586_v60 = vpop.permute.xlu1 %585  ;;  %v770_v61 = vpop.permute.xlu0 %769 }
 0x272   : > { %v582_v63 = vpop.permute.xlu1 %581  ;;  %v876_v1 = vpop.permute.xlu0 %875 }
 0x276   : > { %v774_v3 = vpop.permute.xlu1 %773  ;;  %v1059_v4 = vpop.permute.xlu0 %1058 }
 0x27a   : > { %v872_v7 = vpop.permute.xlu1 %871  ;;  %v2130_v8 = vpop.permute.xlu0 %1264 }
 0x27e   : > { %v1161_v11 = vpop.permute.xlu1 %1160  ;;  %v584_v12 = vpop.permute.xlu0 %583 }
 0x27f   : > { %v588_v13 = vsel %vm587_vm2, %v582_v63, %v584_v12  ;;  %v589_v14 = vsel %vm587_vm2, %v584_v12, %v586_v60  ;;  %v1780_v63 = vld [vmem:[%s2291_s5 + $0x20] sm:$0xf] }
 0x280   : > { %v592_v15 = vsel %vm2132_vm3, %v588_v13, 0.0  ;;  %v593_v16 = vsel %vm2136_vm4, %v589_v14, 0.0 }
 0x281   : > { %1753 = vmatprep.subr.msk.mxu1 %vm345_vm0, %v593_v16 }
 0x282   : > { %1754 = vmatpush1.msk.msra.mxu1 %vm345_vm0, %v592_v15  ;;  %v772_v22 = vpop.permute.xlu0 %771  ;;  %v600_v23 = vpop.permute.xlu1 %599 }
 0x283   : > { %v776_v24 = vsel %vm775_vm5, %v770_v61, %v772_v22  ;;  %v777_v25 = vsel %vm775_vm5, %v772_v22, %v774_v3  ;;  %v604_v26 = vsel %vm603_vm6, %v598_v58, %v600_v23  ;;  %v605_v27 = vsel %vm603_vm6, %v600_v23, %v602_v57  ;;  %1755 = vmatmul.mubr.msk.f32.vlgmr.msra.gmra.mxu1 %vm341_vm1, %v594_v17  ;;  %v1772_v58 = vld [vmem:[%s2291_s5 + $0x18] sm:$0xf] }
 0x284   : > { %v781_v29 = vsel %vm2148_vm7, %v777_v25, 0.0  ;;  %1750 = vmatprep.subr.msk.mxu0 %vm345_vm0, %v605_v27  ;;  %959 = vmatprep.mubr.f32.mxu1 %v1947_v0  ;;  %v780_v30 = vsel %vm2153_vm8, %v776_v24, 0.0 }
 0x285   : > { %1751 = vmatpush1.msk.msra.mxu0 %vm345_vm0, %v604_v26 }
 0x286   : > { %v1061_v31 = vpop.permute.xlu0 %1060  ;;  %1752 = vmatmul.mubr.msk.f32.vlgmr.msra.gmra.mxu0 %vm341_vm1, %v1749_v28  ;;  %1757 = vmatprep.subr.msk.mxu0 %vm345_vm0, %v781_v29  ;;  %v874_v32 = vpop.permute.xlu1 %873 }
 0x287   : > { %v878_v33 = vsel %vm877_vm9, %v872_v7, %v874_v32  ;;  %v879_v34 = vsel %vm877_vm9, %v874_v32, %v876_v1  ;;  %1758 = vmatpush1.msk.msra.mxu0 %vm345_vm0, %v780_v30  ;;  %v1066_v36 = vsel %vm1064_vm10, %v1061_v31, %v1063_v54  ;;  %857 = vmatprep.mubr.f32.mxu0 %v1947_v0 }
 0x288   : > { %v882_v37 = vsel %vm2132_vm3, %v878_v33, 0.0  ;;  %v883_v38 = vsel %vm2136_vm4, %v879_v34, 0.0  ;;  %1765 = vmatprep.subr.msk.mxu0 %vm345_vm0, %v2104_v49  ;;  %v1065_v39 = vsel %vm1064_vm10, %v1059_v4, %v1061_v31  ;;  %v1070_v44 = vsel %vm2148_vm7, %v1066_v36, 0.0 }
 0x289   : > { %1761 = vmatprep.subr.msk.mxu1 %vm345_vm0, %v883_v38  ;;  %v1069_v48 = vsel %vm2153_vm8, %v1065_v39, 0.0 }
 0x28a   : > { %v1267_v41 = vpop.permute.xlu0 %1266  ;;  %1759 = vmatmul.mubr.msk.f32.vlgmr.msra.gmra.mxu0 %vm341_vm1, %v1756_v35  ;;  %1762 = vmatpush1.msk.msra.mxu1 %vm345_vm0, %v882_v37  ;;  %v1163_v42 = vpop.permute.xlu1 %1162 }
 0x28b   : > { %v1272_v45 = vsel %vm1270_vm11, %v1267_v41, %v2126_v55  ;;  %1766 = vmatpush1.msk.msra.mxu0 %vm345_vm0, %v2095_v43  ;;  %v1167_v46 = vsel %vm1166_vm12, %v1161_v11, %v1163_v42  ;;  %v1168_v47 = vsel %vm1166_vm12, %v1163_v42, %v2128_v56  ;;  %1763 = vmatmul.mubr.msk.f32.vlgmr.msra.gmra.mxu1 %vm341_vm1, %v1760_v40 }
 0x28c   : > { %v1172_v49 = vsel %vm2136_vm4, %v1168_v47, 0.0  ;;  %1769 = vmatprep.subr.msk.mxu1 %vm345_vm0, %v1070_v44  ;;  %v1171_v43 = vsel %vm2132_vm3, %v1167_v46, 0.0  ;;  %1044 = vmatprep.mubr.f32.mxu0 %v1947_v0  ;;  %v1271_v56 = vsel %vm1270_vm11, %v2130_v8, %v1267_v41 }
 0x28d   : > { %1770 = vmatpush1.msk.msra.mxu1 %vm345_vm0, %v1069_v48  ;;  %1773 = vmatprep.subr.msk.mxu0 %vm345_vm0, %v1172_v49 }
 0x28e   : > { %1777 = vmatprep.subr.msk.mxu1 %vm345_vm0, %v1272_v45  ;;  %v1363_v52 = vpop.permute.xlu0 %1362  ;;  %v1361_v54 = vpop.permute.xlu1 %1360  ;;  %1767 = vmatmul.mubr.msk.f32.vlgmr.msra.gmra.mxu0 %vm341_vm1, %v1764_v50 }
 0x28f   : > { %1146 = vmatprep.mubr.f32.mxu1 %v1947_v0  ;;  %v1366_v55 = vsel %vm1364_vm13, %v1361_v54, %v1363_v52  ;;  %1774 = vmatpush1.msk.msra.mxu0 %vm345_vm0, %v1171_v43 }
 0x290   : > { %v1370_v57 = vsel %vm2148_vm7, %v1366_v55, 0.0  ;;  %1771 = vmatmul.mubr.msk.f32.vlgmr.msra.gmra.mxu1 %vm341_vm1, %v1768_v51  ;;  %1248 = vmatprep.mubr.f32.mxu0 %v1947_v0 }
 0x291   : > { %1778 = vmatpush1.msk.msra.mxu1 %vm345_vm0, %v1271_v56  ;;  %1781 = vmatprep.subr.msk.mxu0 %vm345_vm0, %v1370_v57 }
 0x292   : > { %1344 = vmatprep.mubr.f32.mxu1 %v1947_v0  ;;  %v1359_v60 = vpop.permute.xlu1 %1358  ;;  %1775 = vmatmul.mubr.msk.f32.vlgmr.msra.gmra.mxu0 %vm341_vm1, %v1772_v58 }
 0x293   : > { %v1365_v61 = vsel %vm1364_vm13, %v1359_v60, %v1361_v54  ;;  %1446 = vmatprep.mubr.f32.mxu0 %v1947_v0 }
 0x294   : > { %v1369_v62 = vsel %vm2153_vm8, %v1365_v61, 0.0  ;;  %1779 = vmatmul.mubr.msk.f32.vlgmr.msra.gmra.mxu1 %vm341_vm1, %v1776_v59 }
 0x295   : > { %1782 = vmatpush1.msk.msra.mxu0 %vm345_vm0, %v1369_v62  ;;  %1553 = vmatprep.mubr.f32.mxu1 %v1947_v0 }
 0x296   : > { %1593 = vmatprep.subr.mxu0 %v2081_v21  ;;  %1783 = vmatmul.mubr.msk.f32.vlgmr.msra.gmra.mxu0 %vm341_vm1, %v1780_v63  ;;  %v1480_v47 = vpop.permute.xlu1 %1479 }
 0x297   : > { %1594 = vmatpush1.msra.mxu0 %v2079_v20  ;;  %1627 = vmatprep.mubr.f32.mxu0 %v1947_v0 }
 0x29a   : > { %1789 = vmatmul.mubr.msk.f32.vlgmr.msra.gmra.mxu0 %vm1560_vm14, %v2123_v53 }
 0x29b   : > { %v1459_v31 = vpop.permute.xlu0 %1458 }
 0x29f   : > { %v1638_v50 = vpop.permute.xlu0 %1637 }
 0x343   : > { %v759_v1 = vpop.f32.mrf.mxu1 }
 0x345   : > { %v761_v4 = vpop.f32.mrf.mxu1 }
 0x346   : > { %v679_v2 = vpop.f32.mrf.mxu0 }
 0x347   : > { %v760_v5 = vadd.f32 %v759_v1, %v679_v2 }
 0x348   : > { %v681_v3 = vpop.f32.mrf.mxu0 }
 0x349   : > { %v762_v7 = vadd.f32 %v761_v4, %v681_v3 }
 0x34a   : > { %v859_v6 = vpop.f32.mrf.mxu0 }
 0x34b   : > { %v864_v8 = vadd.f32 %v859_v6, %v760_v5  ;;  %v961_v9 = vpop.f32.mrf.mxu1 }
 0x34c   : > { %v861_v10 = vpop.f32.mrf.mxu0 }
 0x34d   : > { %v966_v21 = vadd.f32 %v961_v9, %v864_v8  ;;  %v865_v11 = vadd.f32 %v861_v10, %v762_v7  ;;  %v963_v12 = vpop.f32.mrf.mxu1 }
 0x34e   : > { %v1046_v20 = vpop.f32.mrf.mxu0 }
 0x34f   : > { %v967_v13 = vadd.f32 %v963_v12, %v865_v11  ;;  %v1051_v14 = vadd.f32 %v1046_v20, %v966_v21 }
 0x350   : > { %v1148_v0 = vpop.f32.mrf.mxu1  ;;  %v1048_v15 = vpop.f32.mrf.mxu0 }
 0x351   : > { %v1153_v16 = vadd.f32 %v1148_v0, %v1051_v14  ;;  %v1052_v53 = vadd.f32 %v1048_v15, %v967_v13 }
 0x352   : > { %v1150_v17 = vpop.f32.mrf.mxu1  ;;  %v1250_v18 = vpop.f32.mrf.mxu0 }
 0x353   : > { %v1154_v19 = vadd.f32 %v1150_v17, %v1052_v53  ;;  %v1255_v22 = vadd.f32 %v1250_v18, %v1153_v16 }
 0x354   : > { %v1346_v23 = vpop.f32.mrf.mxu1  ;;  %v1252_v24 = vpop.f32.mrf.mxu0 }
 0x355   : > { %v1351_v25 = vadd.f32 %v1346_v23, %v1255_v22  ;;  %v1256_v26 = vadd.f32 %v1252_v24, %v1154_v19 }
 0x356   : > { %v1348_v27 = vpop.f32.mrf.mxu1  ;;  %v1448_v28 = vpop.f32.mrf.mxu0 }
 0x357   : > { %v1352_v29 = vadd.f32 %v1348_v27, %v1256_v26  ;;  %v1453_v30 = vadd.f32 %v1448_v28, %v1351_v25 }
 0x358   : > { %v1450_v32 = vpop.f32.mrf.mxu0 }
 0x359   : > { %v1461_v33 = vadd.f32 %v1459_v31, %v1453_v30  ;;  %v1454_v34 = vadd.f32 %v1450_v32, %v1352_v29 }
 0x35a   : > { %v1629_v48 = vpop.f32.mrf.mxu0 }
 0x35b   : > { %v1784_v35 = vmul.f32 -1.442695, %v1461_v33  ;;  %v1462_v36 = vadd.f32 %v1459_v31, %v1454_v34 }
 0x35c   : > { %v1631_v52 = vpop.f32.mrf.mxu0 }
 0x35d   : > { %1868 = vpow2.f32 %v1784_v35  ;;  %v1785_v37 = vmul.f32 -1.442695, %v1462_v36 }
 0x35f   : > { %1870 = vpow2.f32 %v1785_v37 }
 0x36a   : > { %v1869_v38 = vpop.eup %1868 }
 0x36b   : > { %v1469_v39 = vadd.f32 1.0, %v1869_v38 }
 0x36c   : > { %v1871_v40 = vpop.eup %1870 }
 0x36d   : > { %v1470_v41 = vadd.f32 1.0, %v1871_v40  ;;  %1872 = vrcp.f32 %v1469_v39 }
 0x36f   : > { %1874 = vrcp.f32 %v1470_v41 }
 0x37a   : > { %v1873_v42 = vpop.eup %1872 }
 0x37b   : > { %v1475_v46 = vmul.f32 %v1873_v42, %v1461_v33 }
 0x37c   : > { %v1875_v44 = vpop.eup %1874 }
 0x37d   : > { %v1476_v45 = vmul.f32 %v1875_v44, %v1462_v36 }
 0x37f   : > { %1786 = vmatprep.subr.msk.mxu1 %vm345_vm0, %v1476_v45 }
 0x380   : > { %1787 = vmatpush1.msk.msra.mxu1 %vm345_vm0, %v1475_v46 }
 0x381   : > { %1788 = vmatmul.mubr.msk.f32.vlgmr.msra.gmra.mxu1 %vm341_vm1, %v1480_v47 }
 0x441   : > { %v1555_v49 = vpop.f32.mrf.mxu1 }
 0x442   : > { %v1630_v43 = vadd.f32 %v1629_v48, %v1555_v49 }
 0x443   : > { %v1557_v51 = vpop.f32.mrf.mxu1 }
 0x444   : > { %v1640_v54 = vadd.f32 %v1638_v50, %v1630_v43  ;;  %v1632_v55 = vadd.f32 %v1631_v52, %v1557_v51 }
 0x446   : > { %v1790_v56 = vmul.f32 -1.442695, %v1640_v54  ;;  %v1641_v57 = vadd.f32 %v1638_v50, %v1632_v55 }
 0x448   : > { %1876 = vpow2.f32 %v1790_v56  ;;  %v1791_v58 = vmul.f32 -1.442695, %v1641_v57 }
 0x44a   : > { %1878 = vpow2.f32 %v1791_v58 }
 0x455   : > { %v1877_v59 = vpop.eup %1876 }
 0x456   : > { %v1648_v60 = vadd.f32 1.0, %v1877_v59 }
 0x457   : > { %v1879_v61 = vpop.eup %1878 }
 0x458   : > { %1880 = vrcp.f32 %v1648_v60  ;;  %v1649_v62 = vadd.f32 1.0, %v1879_v61 }
 0x45a   : > { %1882 = vrcp.f32 %v1649_v62 }
 0x465   : > { %v1881_v63 = vpop.eup %1880 }
 0x466   : > { %v1654_v1 = vmul.f32 %v1881_v63, %v1640_v54 }
 0x467   : > { %v1883_v2 = vpop.eup %1882 }
 0x468   : > { %v1655_v3 = vmul.f32 %v1883_v2, %v1641_v57  ;;  %1656 = vst [vmem:[%s325_s22] sm:$0xff] %v1654_v1 }
 0x46a   : > { %1657 = vst [vmem:[%s325_s22 + $0x8] sm:$0xff] %v1655_v3 }
 0x46b   : > { %1898 = shalt.err (!%p1895_p3)
}
 0x46c   : > { %s1899_s17 = scalar_lea.hbm %s1671_s26, 256  ;;  %s1903_s22 = scalar_lea.hbm %s2295_s9, 512 }
 0x46d   : > { %p1900_p4 = scmp.ne.s32.totalorder %s1671_s26, %s1899_s17  ;;  %p1904_p9 = scmp.lt.s32.totalorder %s1671_s26, %s2295_s9 }
 0x46e   : > { %p1905_p10 = scmp.lt.s32.totalorder %s1903_s22, %s1899_s17 }
 0x46f   : > { %p1901_p7 = pnand %p1900_p4, %p2047_p5 }
 0x470   : > { %p1906_p11 = por %p1905_p10, %p1904_p9 }
 0x471   : > { %p1902_p8 = pneg %p1901_p7 }
 0x473   : > { %p1907_p12 = pnand %p1906_p11, %p1902_p8 }
 0x475   : > { %1910 = shalt.err (!%p1907_p12)
}
 0x476   : > { %1799 = dma.vmem_to_hbm [thread:$0]  (%p2047_p5), %s1674_s24, 256, %s1671_s26, %s1659_s27  }
 0x477 PF: > { %p1805_p13 = scmp.ge.s32.totalorder %s1945_s12, 2  ;;  %s1685_s28 = sand.u32 1, %s1933_s30  }
 0x478   : > { %s1686_s29 = scalar_lea.sflag [#allocation4], %s1685_s28 }
 0x479   : > { %p1802_p0 = pnand %p1805_p13, %p2051_p6 }
 0x47b   : > { %p1803_p1 = pneg %p1802_p0 }
 0x47d   : > { %1928 = dma.done.wait (%p1803_p1), %s1686_s29, 256  }
 0x47e   : > { %1930 = vsyncadd (%p1803_p1), %s1686_s29, 4294967040  ;;  %p19_p2 = scmp.ge.s32.totalorder %s2034_s15, 4   ;;  %s2306_s30 = smov %s1937_s10 }
 0x47f   : > { %s2307_s10 = smov %s1941_s11  ;;  %s2308_s11 = smov %s2045_s18 }
 0x480   : > { %s2309_s12 = smov %s2034_s15  ;;  %21 = sbr.rel (!%p19_p2) target bundleno = 3 (0x3), region = 99 }
 0x485   :  { %1691 = vsyncpa [#allocation4], 1 }
 0x486   :  { %1693 = vsyncpa [#allocation4 + $0x1], 1 }

</bundles_post_ra>
